<compile_context>
chip_gen: v7x
topology: tpu7x:2x2x1
jax: 0.10.0
libtpu: 0.0.40
codegen_flags: <defaults>
</compile_context>

<pallas_src>
import functools

import jax
import jax.numpy as jnp
from jax.experimental import pallas as pl
from jax.experimental.pallas import tpu as pltpu

KSIZE = 4
STRIDE = 2
PAD = 1
BN_EPS = 1e-5
LEAKY_SLOPE = 0.2
VMEM_LIMIT_BYTES = 48 * 1024 * 1024   # stays under v7x's 64 MiB physical VMEM


# ----------------------------------------------------------------------------- wrappers

def _im2col_nks(x):
    """x: (N, C, H, W) -> patches (N, K, S) in bf16, K = C*16 (flat order ci*16 + i*4 + j),
    S = Ho*Wo.  Layout chosen so no large transpose is needed and K order matches the
    OIHW weight flatten."""
    N, C, H, W = x.shape
    Ho = (H + 2 * PAD - KSIZE) // STRIDE + 1
    Wo = (W + 2 * PAD - KSIZE) // STRIDE + 1
    xb = x.astype(jnp.bfloat16)
    xp = jnp.pad(xb, ((0, 0), (0, 0), (PAD, PAD), (PAD, PAD)))
    cols = []
    for i in range(KSIZE):
        for j in range(KSIZE):
            cols.append(xp[:, :, i:i + STRIDE * Ho:STRIDE, j:j + STRIDE * Wo:STRIDE])
    patches = jnp.stack(cols, axis=2)                         # (N, C, 16, Ho, Wo)
    patches = patches.reshape(N, C * KSIZE * KSIZE, Ho * Wo)  # (N, K, S)
    return patches, Ho, Wo


def _choose_tile_s(S, K, Cout, vmem_budget=24 * 1024 * 1024):
    """Largest spatial tile that (a) divides S, (b) is a multiple of 128 (lane-dense and
    satisfies the (8,128) block rule), (c) keeps double-buffered per-step bytes under the
    budget.  Falls back to full S (block == full dim is always legal)."""
    cands = [d for d in range(128, S + 1, 128) if S % d == 0]
    if not cands:
        return S
    for d in sorted(cands, reverse=True):
        per_step = (2 * K * d * 2            # patches tile (bf16), double-buffered
                    + 2 * Cout * d * 4       # y tile (worst case f32), double-buffered
                    + 2 * Cout * K * 2       # resident weight
                    + 4 * Cout * 4)          # stats
        if per_step <= vmem_budget:
            return d
    return cands[0]


# ------------------------------------------------------------------------------ kernels

def _make_conv_lrelu_kernel(use_bn: bool):
    def kernel(p_ref, w_ref, y_ref, *maybe_stats):
        # p_ref: (1, K, TILE_S) bf16 ; w_ref: (Cout, K) bf16
        # MXU: (Cout, K) @ (K, TILE_S) -> (Cout, TILE_S), f32 accumulate.
        acc = jax.lax.dot_general(
            w_ref[...], p_ref[0],
            dimension_numbers=(((1,), (0,)), ((), ())),
            preferred_element_type=jnp.float32)
        # LeakyReLU(0.2)  (slope < 1 so max(x, 0.2x) == leaky_relu(x))
        y = jnp.maximum(acc, LEAKY_SLOPE * acc)
        y_ref[0] = y.astype(y_ref.dtype)
        if use_bn:
            sum_ref, sq_ref = maybe_stats                   # (1, 1, Cout, 1) f32 each
            sum_ref[0, 0] = jnp.sum(y, axis=-1, keepdims=True)
            sq_ref[0, 0] = jnp.sum(y * y, axis=-1, keepdims=True)
    return kernel


def _bn_apply_kernel(y_ref, scale_ref, shift_ref, o_ref):
    # y_ref: (1, Cout, TILE_S) bf16 ; scale/shift: (Cout, 1) f32 ; o_ref: (1, Cout, TILE_S) f32
    o_ref[0] = y_ref[0].astype(jnp.float32) * scale_ref[...] + shift_ref[...]


# ------------------------------------------------------------------------------ forward

def conv_block_forward(x, weight, gamma, beta, use_bn=True):
    """x: (N, Cin, H, W); weight: (Cout, Cin, 4, 4) OIHW; gamma/beta: (Cout,). Returns NCHW f32."""
    N, Cin, H, W = x.shape
    Cout = weight.shape[0]
    K = Cin * KSIZE * KSIZE

    patches, Ho, Wo = _im2col_nks(x)                        # (N, K, S) bf16
    S = Ho * Wo
    w_mat = weight.reshape(Cout, K).astype(jnp.bfloat16)    # (Cout, K)

    TILE_S = _choose_tile_s(S, K, Cout)
    num_s = S // TILE_S
    grid = (N, num_s)

    cparams = pltpu.CompilerParams(
        dimension_semantics=("parallel", "parallel"),
        vmem_limit_bytes=VMEM_LIMIT_BYTES)

    y_dtype = jnp.bfloat16 if use_bn else jnp.float32       # bf16 intermediate halves traffic
    y_spec = pl.BlockSpec((1, Cout, TILE_S), lambda n, s: (n, 0, s))
    in_specs = [
        pl.BlockSpec((1, K, TILE_S), lambda n, s: (n, 0, s)),   # patches tile
        pl.BlockSpec((Cout, K), lambda n, s: (0, 0)),           # weight (resident)
    ]

    if use_bn:
        stats_spec = pl.BlockSpec((1, 1, Cout, 1), lambda n, s: (n, s, 0, 0))
        out_shape = (
            jax.ShapeDtypeStruct((N, Cout, S), y_dtype),
            jax.ShapeDtypeStruct((N, num_s, Cout, 1), jnp.float32),
            jax.ShapeDtypeStruct((N, num_s, Cout, 1), jnp.float32),
        )
        out_specs = (y_spec, stats_spec, stats_spec)
    else:
        out_shape = jax.ShapeDtypeStruct((N, Cout, S), y_dtype)
        out_specs = y_spec

    elt_y = 2 if use_bn else 4
    cost1 = pl.CostEstimate(
        flops=2 * N * S * K * Cout,
        transcendentals=0,
        bytes_accessed=int(N * K * S * 2 + Cout * K * 2 + N * Cout * S * elt_y))

    result = pl.pallas_call(
        _make_conv_lrelu_kernel(use_bn),
        grid=grid,
        in_specs=in_specs,
        out_specs=out_specs,
        out_shape=out_shape,
        compiler_params=cparams,
        cost_estimate=cost1,
    )(patches, w_mat)

    if not use_bn:
        return result.reshape(N, Cout, Ho, Wo)

    y, psum, psq = result
    M = N * S
    total_sum = jnp.sum(psum[..., 0], axis=(0, 1))          # (Cout,)
    total_sq = jnp.sum(psq[..., 0], axis=(0, 1))            # (Cout,)
    mean = total_sum / M
    var = jnp.maximum(total_sq / M - mean * mean, 0.0)      # biased variance (training mode)
    scale = gamma.astype(jnp.float32) * jax.lax.rsqrt(var + BN_EPS)
    shift = beta.astype(jnp.float32) - mean * scale

    cost2 = pl.CostEstimate(
        flops=2 * N * Cout * S,
        transcendentals=0,
        bytes_accessed=int(N * Cout * S * 2 + N * Cout * S * 4))

    y_bn = pl.pallas_call(
        _bn_apply_kernel,
        grid=grid,
        in_specs=[
            y_spec,
            pl.BlockSpec((Cout, 1), lambda n, s: (0, 0)),
            pl.BlockSpec((Cout, 1), lambda n, s: (0, 0)),
        ],
        out_specs=pl.BlockSpec((1, Cout, TILE_S), lambda n, s: (n, 0, s)),
        out_shape=jax.ShapeDtypeStruct((N, Cout, S), jnp.float32),
        compiler_params=cparams,
        cost_estimate=cost2,
    )(y, scale.reshape(Cout, 1), shift.reshape(Cout, 1))

    # channel-major already: NCHW is a free reshape (no transpose)
    return y_bn.reshape(N, Cout, Ho, Wo)


# ---------------------------------------------------------------------------- reference

def _reference(x, weight, gamma, beta, use_bn=True):
    y = jax.lax.conv_general_dilated(
        x.astype(jnp.float32), weight.astype(jnp.float32),
        window_strides=(STRIDE, STRIDE), padding=((PAD, PAD), (PAD, PAD)),
        dimension_numbers=("NCHW", "OIHW", "NCHW"))
    y = jnp.where(y > 0, y, LEAKY_SLOPE * y)
    if use_bn:
        mean = y.mean(axis=(0, 2, 3), keepdims=True)
        var = ((y - mean) ** 2).mean(axis=(0, 2, 3), keepdims=True)
        y = (y - mean) * jax.lax.rsqrt(var + BN_EPS)
        y = y * gamma[None, :, None, None] + beta[None, :, None, None]
    return y


if __name__ == "__main__":
    key = jax.random.PRNGKey(0)
    kx, kw = jax.random.split(key)

    N, Cin, H, W = 2, 4, 16, 16
    Cout = 8

    x = jax.random.normal(kx, (N, Cin, H, W), dtype=jnp.float32)
    weight = 0.1 * jax.random.normal(kw, (Cout, Cin, KSIZE, KSIZE), dtype=jnp.float32)
    gamma = jnp.ones((Cout,), dtype=jnp.float32)   # BatchNorm2d default affine
    beta = jnp.zeros((Cout,), dtype=jnp.float32)

    # use_bn=True path (the configured module)
    fwd = jax.jit(functools.partial(conv_block_forward, use_bn=True))
    out = jax.block_until_ready(fwd(x, weight, gamma, beta))
    ref = jax.block_until_ready(_reference(x, weight, gamma, beta, use_bn=True))
    assert out.shape == (N, Cout, H // 2, W // 2), out.shape
    # bf16 MXU operands + bf16 intermediate -> compare to f32 reference at bf16-level tolerance
    max_err = float(jnp.max(jnp.abs(out - ref)))
    assert max_err < 5e-2, max_err

    # use_bn=False path (nn.Identity tail)
    fwd_nb = jax.jit(functools.partial(conv_block_forward, use_bn=False))
    out_nb = jax.block_until_ready(fwd_nb(x, weight, gamma, beta))
    ref_nb = _reference(x, weight, gamma, beta, use_bn=False)
    max_err_nb = float(jnp.max(jnp.abs(out_nb - ref_nb)))
    assert max_err_nb < 5e-2, max_err_nb

    print("KERNEL_OK")
</pallas_src>

<mosaic_0001>
module attributes {stable_mosaic.version = 11 : i64} {
  func.func @kernel(%arg0: i32, %arg1: i32, %arg2: memref<1x64x64xbf16, #tpu.memory_space<vmem>>, %arg3: memref<8x64xbf16, #tpu.memory_space<vmem>>, %arg4: memref<1x8x64xbf16, #tpu.memory_space<vmem>>, %arg5: memref<1x1x8x1xf32, #tpu.memory_space<vmem>>, %arg6: memref<1x1x8x1xf32, #tpu.memory_space<vmem>>) attributes {dimension_semantics = [#tpu.dimension_semantics<parallel>, #tpu.dimension_semantics<parallel>], iteration_bounds = array<i64: 2, 1>, scalar_prefetch = 0 : i64, scratch_operands = 0 : i64, tpu.core_type = #tpu.core_type<tc>, window_params = [{transform_indices = @transform_0, window_bounds = array<i64: 1, 64, 64>}, {pipeline_mode = #tpu.pipeline_mode<synchronous>, transform_indices = @transform_1, window_bounds = array<i64: 8, 64>}, {transform_indices = @transform_2, window_bounds = array<i64: 1, 8, 64>}, {transform_indices = @transform_3, window_bounds = array<i64: 1, 1, 8, 1>}, {transform_indices = @transform_4, window_bounds = array<i64: 1, 1, 8, 1>}]} {
    %c0 = arith.constant 0 : index
    %c0_0 = arith.constant 0 : index
    %0 = vector.load %arg3[%c0, %c0_0] : memref<8x64xbf16, #tpu.memory_space<vmem>>, vector<8x64xbf16>
    %c0_1 = arith.constant 0 : index
    %c0_2 = arith.constant 0 : index
    %c0_3 = arith.constant 0 : index
    %1 = vector.load %arg2[%c0_1, %c0_2, %c0_3] : memref<1x64x64xbf16, #tpu.memory_space<vmem>>, vector<1x64x64xbf16>
    %2 = vector.shape_cast %1 : vector<1x64x64xbf16> to vector<64x64xbf16>
    %cst = arith.constant dense<0.000000e+00> : vector<8x64xf32>
    %3 = tpu.matmul %0, %2, %cst {dimension_numbers = #tpu.dot_dimension_numbers<[1], [0], [0], [1], [0, 0, 1, 1], [], []>} : vector<8x64xbf16>, vector<64x64xbf16>, vector<8x64xf32> -> vector<8x64xf32>
    %cst_4 = arith.constant 2.000000e-01 : f32
    %4 = vector.broadcast %cst_4 : f32 to vector<8x64xf32>
    %5 = arith.mulf %4, %3 : vector<8x64xf32>
    %6 = arith.maximumf %3, %5 : vector<8x64xf32>
    %7 = arith.truncf %6 : vector<8x64xf32> to vector<8x64xbf16>
    %c0_5 = arith.constant 0 : index
    %c0_6 = arith.constant 0 : index
    %c0_7 = arith.constant 0 : index
    %8 = vector.load %arg4[%c0_5, %c0_6, %c0_7] : memref<1x8x64xbf16, #tpu.memory_space<vmem>>, vector<1x8x64xbf16>
    %9 = vector.shape_cast %8 : vector<1x8x64xbf16> to vector<8x64xbf16>
    %10 = vector.shape_cast %7 : vector<8x64xbf16> to vector<1x8x64xbf16>
    tpu.vector_store %arg4[%c0_5, %c0_6, %c0_7], %10 {strides = array<i32>} : memref<1x8x64xbf16, #tpu.memory_space<vmem>>, vector<1x8x64xbf16>,
    %cst_8 = arith.constant dense<0.000000e+00> : vector<8xf32>
    %11 = vector.multi_reduction <add>, %6, %cst_8 [1] : vector<8x64xf32> to vector<8xf32>
    %12 = vector.shape_cast %11 : vector<8xf32> to vector<8x1xf32>
    %c0_9 = arith.constant 0 : index
    %c0_10 = arith.constant 0 : index
    %c0_11 = arith.constant 0 : index
    %c0_12 = arith.constant 0 : index
    %13 = vector.load %arg5[%c0_9, %c0_10, %c0_11, %c0_12] : memref<1x1x8x1xf32, #tpu.memory_space<vmem>>, vector<1x1x8x1xf32>
    %14 = vector.shape_cast %13 : vector<1x1x8x1xf32> to vector<8x1xf32>
    %15 = vector.shape_cast %12 : vector<8x1xf32> to vector<1x1x8x1xf32>
    tpu.vector_store %arg5[%c0_9, %c0_10, %c0_11, %c0_12], %15 {strides = array<i32>} : memref<1x1x8x1xf32, #tpu.memory_space<vmem>>, vector<1x1x8x1xf32>,
    %16 = arith.mulf %6, %6 : vector<8x64xf32>
    %cst_13 = arith.constant dense<0.000000e+00> : vector<8xf32>
    %17 = vector.multi_reduction <add>, %16, %cst_13 [1] : vector<8x64xf32> to vector<8xf32>
    %18 = vector.shape_cast %17 : vector<8xf32> to vector<8x1xf32>
    %c0_14 = arith.constant 0 : index
    %c0_15 = arith.constant 0 : index
    %c0_16 = arith.constant 0 : index
    %c0_17 = arith.constant 0 : index
    %19 = vector.load %arg6[%c0_14, %c0_15, %c0_16, %c0_17] : memref<1x1x8x1xf32, #tpu.memory_space<vmem>>, vector<1x1x8x1xf32>
    %20 = vector.shape_cast %19 : vector<1x1x8x1xf32> to vector<8x1xf32>
    %21 = vector.shape_cast %18 : vector<8x1xf32> to vector<1x1x8x1xf32>
    tpu.vector_store %arg6[%c0_14, %c0_15, %c0_16, %c0_17], %21 {strides = array<i32>} : memref<1x1x8x1xf32, #tpu.memory_space<vmem>>, vector<1x1x8x1xf32>,
    return
  }
  func.func @transform_0(%arg0: i32, %arg1: i32) -> (i32, i32, i32) {
    %c0_i32 = arith.constant 0 : i32
    %c0_i32_0 = arith.constant 0 : i32
    return %arg0, %c0_i32, %arg1 : i32, i32, i32
  }
  func.func @transform_1(%arg0: i32, %arg1: i32) -> (i32, i32) {
    %c0_i32 = arith.constant 0 : i32
    %c0_i32_0 = arith.constant 0 : i32
    %c0_i32_1 = arith.constant 0 : i32
    return %c0_i32, %c0_i32_0 : i32, i32
  }
  func.func @transform_2(%arg0: i32, %arg1: i32) -> (i32, i32, i32) {
    %c0_i32 = arith.constant 0 : i32
    %c0_i32_0 = arith.constant 0 : i32
    return %arg0, %c0_i32, %arg1 : i32, i32, i32
  }
  func.func @transform_3(%arg0: i32, %arg1: i32) -> (i32, i32, i32, i32) {
    %c0_i32 = arith.constant 0 : i32
    %c0_i32_0 = arith.constant 0 : i32
    %c0_i32_1 = arith.constant 0 : i32
    return %arg0, %arg1, %c0_i32, %c0_i32_0 : i32, i32, i32, i32
  }
  func.func @transform_4(%arg0: i32, %arg1: i32) -> (i32, i32, i32, i32) {
    %c0_i32 = arith.constant 0 : i32
    %c0_i32_0 = arith.constant 0 : i32
    %c0_i32_1 = arith.constant 0 : i32
    return %arg0, %arg1, %c0_i32, %c0_i32_0 : i32, i32, i32, i32
  }
}

module attributes {stable_mosaic.version = 11 : i64} {
  func.func @_bn_apply_kernel(%arg0: i32, %arg1: i32, %arg2: memref<1x8x64xbf16, #tpu.memory_space<vmem>>, %arg3: memref<8x1xf32, #tpu.memory_space<vmem>>, %arg4: memref<8x1xf32, #tpu.memory_space<vmem>>, %arg5: memref<1x8x64xf32, #tpu.memory_space<vmem>>) attributes {dimension_semantics = [#tpu.dimension_semantics<parallel>, #tpu.dimension_semantics<parallel>], iteration_bounds = array<i64: 2, 1>, scalar_prefetch = 0 : i64, scratch_operands = 0 : i64, tpu.core_type = #tpu.core_type<tc>, window_params = [{transform_indices = @transform_0, window_bounds = array<i64: 1, 8, 64>}, {pipeline_mode = #tpu.pipeline_mode<synchronous>, transform_indices = @transform_1, window_bounds = array<i64: 8, 1>}, {pipeline_mode = #tpu.pipeline_mode<synchronous>, transform_indices = @transform_2, window_bounds = array<i64: 8, 1>}, {transform_indices = @transform_3, window_bounds = array<i64: 1, 8, 64>}]} {
    %c0 = arith.constant 0 : index
    %c0_0 = arith.constant 0 : index
    %c0_1 = arith.constant 0 : index
    %0 = vector.load %arg2[%c0, %c0_0, %c0_1] : memref<1x8x64xbf16, #tpu.memory_space<vmem>>, vector<1x8x64xbf16>
    %1 = vector.shape_cast %0 : vector<1x8x64xbf16> to vector<8x64xbf16>
    %2 = arith.extf %1 : vector<8x64xbf16> to vector<8x64xf32>
    %c0_2 = arith.constant 0 : index
    %c0_3 = arith.constant 0 : index
    %3 = vector.load %arg3[%c0_2, %c0_3] : memref<8x1xf32, #tpu.memory_space<vmem>>, vector<8x1xf32>
    %4 = vector.broadcast %3 : vector<8x1xf32> to vector<8x64xf32>
    %5 = arith.mulf %2, %4 : vector<8x64xf32>
    %c0_4 = arith.constant 0 : index
    %c0_5 = arith.constant 0 : index
    %6 = vector.load %arg4[%c0_4, %c0_5] : memref<8x1xf32, #tpu.memory_space<vmem>>, vector<8x1xf32>
    %7 = vector.broadcast %6 : vector<8x1xf32> to vector<8x64xf32>
    %8 = arith.addf %5, %7 : vector<8x64xf32>
    %c0_6 = arith.constant 0 : index
    %c0_7 = arith.constant 0 : index
    %c0_8 = arith.constant 0 : index
    %9 = vector.load %arg5[%c0_6, %c0_7, %c0_8] : memref<1x8x64xf32, #tpu.memory_space<vmem>>, vector<1x8x64xf32>
    %10 = vector.shape_cast %9 : vector<1x8x64xf32> to vector<8x64xf32>
    %11 = vector.shape_cast %8 : vector<8x64xf32> to vector<1x8x64xf32>
    tpu.vector_store %arg5[%c0_6, %c0_7, %c0_8], %11 {strides = array<i32>} : memref<1x8x64xf32, #tpu.memory_space<vmem>>, vector<1x8x64xf32>,
    return
  }
  func.func @transform_0(%arg0: i32, %arg1: i32) -> (i32, i32, i32) {
    %c0_i32 = arith.constant 0 : i32
    %c0_i32_0 = arith.constant 0 : i32
    return %arg0, %c0_i32, %arg1 : i32, i32, i32
  }
  func.func @transform_1(%arg0: i32, %arg1: i32) -> (i32, i32) {
    %c0_i32 = arith.constant 0 : i32
    %c0_i32_0 = arith.constant 0 : i32
    %c0_i32_1 = arith.constant 0 : i32
    return %c0_i32, %c0_i32_0 : i32, i32
  }
  func.func @transform_2(%arg0: i32, %arg1: i32) -> (i32, i32) {
    %c0_i32 = arith.constant 0 : i32
    %c0_i32_0 = arith.constant 0 : i32
    %c0_i32_1 = arith.constant 0 : i32
    return %c0_i32, %c0_i32_0 : i32, i32
  }
  func.func @transform_3(%arg0: i32, %arg1: i32) -> (i32, i32, i32) {
    %c0_i32 = arith.constant 0 : i32
    %c0_i32_0 = arith.constant 0 : i32
    return %arg0, %c0_i32, %arg1 : i32, i32, i32
  }
}

</mosaic_0001>

<bundles_post_ra>
// kernel: conv_block_forward.3
= control target key start
LH: loop header
LB: loop body
LE: loop exit
PB: predicated region body
PF: predicated region fallthrough
CT: control target
= control target key end

     0   :  { %s369_s12 = smov 0   ;;  %s371_s13 = smov 0   ;;  %s405_s0 = inlined_call_operand.vmem [shape: bf16[2,8,64], index: 0, kind: input, shape index: {}]   ;;  %s406_s1 = inlined_call_operand.vmem [shape: f32[8,1], index: 1, kind: input, shape index: {}]   ;;  %s407_s2 = inlined_call_operand.vmem [shape: f32[8,1], index: 2, kind: input, shape index: {}]   ;;  %s408_s3 = inlined_call_operand.vmem [shape: f32[2,8,64], index: 3, kind: output, shape index: {}]  }
   0x1   :  { %s373_s14 = smov 0  }
   0x2 LB: > { %s25_s15 = sadd.s32 1, %s342_s13  ;;  %p293_p0 = scmp.ge.s32.totalorder %s346_s14, 1  ;;  %s346_s14 = sphi %s373_s14, %s13_s14   ;;  %s342_s13 = sphi %s371_s13, %s410_s13   ;;  %s338_s12 = sphi %s369_s12, %s409_s12  }
   0x3   : > { %p27_p1 = scmp.ge.s32.totalorder %s25_s15, 2  ;;  %p155_p2 = scmp.lt.s32.totalorder %s346_s14, 3 }
   0x5   : > { %s412_s15 = smov (%p27_p1, %s25_s15), 0  ;;  %p156_p3 = pnand %p293_p0, %p155_p2 }
   0x6   : > { %v199_v0 = vld [vmem:[%s406_s1] sm:$0xff] (!%p156_p3)  ;;  %v348_v1 = vmov (!%p156_p3), 0   ;;  %p183_p4 = scmp.lt.s32.totalorder (!%p156_p3), %s338_s12, 1  ;;  %vm213_vm0 = vcmask (!%p156_p3), 523264  }
   0x7   : > { %159 = sbr.rel (%p156_p3) target bundleno = 143 (0x8f), region = 32  ;;  %323 = vset.pattern.permute.xlu0 (!%p156_p3), %v348_v1  ;;  %v206_v2 = vld [vmem:[%s407_s2] sm:$0xff] (!%p156_p3) }
   0x8   : > { %202 = vperm.xlu0 (!%p156_p3), %323, %v199_v0  }
   0xc   : > { %209 = vperm.xlu0 (!%p156_p3), %323, %v206_v2  }
   0xe   : > { %s414_s12 = smov (!%p183_p4, %s338_s12), 1 }
   0xf   : > { %s294_s20 = sshll.u32 %s414_s12, 2  ;;  %s295_s24 = sshll.u32 %s414_s12, 3 }
  0x10   : > { %s189_s23 = scalar_lea.vmem %s405_s0, %s294_s20  ;;  %s196_s27 = scalar_lea.vmem %s408_s3, %s295_s24 }
  0x11   : > { %v197_v3 = vld [vmem:[%s189_s23] sm:$0xf] }
  0x12   : > { %v198_v4 = vunpack.c.l.bf16 %v197_v3 }
  0x87   : > { %v203_v5 = vpop.permute.xlu0 %202 }
  0x88   : > { %v205_v6 = vmul.f32 %v203_v5, %v198_v4 }
  0x8b   : > { %v210_v7 = vpop.permute.xlu0 %209 }
  0x8c   : > { %v212_v8 = vadd.f32 %v210_v7, %v205_v6 }
  0x8e   : > { %214 = vst.msk [vmem:[%s196_s27] sm:$0xff] %vm213_vm0, %v212_v8 }
  0x8f PF: > { %s13_s14 = sadd.s32 1, %s346_s14   ;;  %s409_s12 = smov %s342_s13 }
  0x90   : > { %p10_p5 = scmp.ge.s32.totalorder %s13_s14, 4   ;;  %s410_s13 = smov %s412_s15 }
  0x92   :  { %12 = sbr.rel (!%p10_p5) target bundleno = 2 (0x2), region = 62 }

// kernel: conv_block_forward.2
= control target key start
LH: loop header
LB: loop body
LE: loop exit
PB: predicated region body
PF: predicated region fallthrough
CT: control target
= control target key end

     0   :  { %s632_s15 = smov 0   ;;  %s634_s16 = smov 0   ;;  %s682_s0 = inlined_call_operand.vmem [shape: bf16[2,64,64], index: 0, kind: input, shape index: {}]   ;;  %s683_s1 = inlined_call_operand.vmem [shape: bf16[8,64], index: 1, kind: input, shape index: {}]   ;;  %s684_s2 = inlined_call_operand.vmem [shape: bf16[2,8,64], index: 2, kind: output, shape index: {0}]   ;;  %s685_s3 = inlined_call_operand.vmem [shape: f32[2,1,8,1], index: 3, kind: output, shape index: {1}]   ;;  %s686_s4 = inlined_call_operand.vmem [shape: f32[2,1,8,1], index: 4, kind: output, shape index: {2}]  }
   0x1   :  { %s636_s17 = smov 0  }
   0x2 LB: > { %s27_s18 = sadd.s32 1, %s599_s16  ;;  %p520_p0 = scmp.ge.s32.totalorder %s603_s17, 1  ;;  %s603_s17 = sphi %s636_s17, %s15_s17   ;;  %s599_s16 = sphi %s634_s16, %s688_s16   ;;  %s595_s15 = sphi %s632_s15, %s687_s15  }
   0x3   : > { %p29_p1 = scmp.ge.s32.totalorder %s27_s18, 2  ;;  %p190_p2 = scmp.lt.s32.totalorder %s603_s17, 3 }
   0x5   : > { %s690_s18 = smov (%p29_p1, %s27_s18), 0  ;;  %p191_p3 = pnand %p520_p0, %p190_p2 }
   0x6   : > { %p235_p4 = scmp.lt.s32.totalorder (!%p191_p3), %s595_s15, 1  ;;  %v605_v0 = vmov (!%p191_p3), 0.0   ;;  %vm606_vm0 = vmmov (!%p191_p3), 0   ;;  %v265_v5 = vld [vmem:[%s683_s1] sm:$0xf] (!%p191_p3)  ;;  %vm298_vm1 = vcmask (!%p191_p3), 523264  }
   0x7   : > { %194 = sbr.rel (%p191_p3) target bundleno = 397 (0x18d), region = 28  ;;  %539 = vmatprep.subr.bf16.mxu0 (!%p191_p3), %v605_v0  ;;  %547 = vmatprep.mubr.msk.bf16.mxu0 (!%p191_p3), %vm606_vm0, %v605_v0  ;;  %vm345_vm2 = vcmask (!%p191_p3), 519168   ;;  %vm350_vm3 = vcmask (!%p191_p3), 7168  }
   0xe   : > { %s692_s15 = smov (!%p235_p4, %s595_s15), 1 }
   0xf   : > { %s533_s19 = sshll.u32 %s692_s15, 5  ;;  %s523_s25 = sshll.u32 %s692_s15, 2 }
  0x10   : > { %s242_s22 = scalar_lea.vmem %s682_s0, %s533_s19  ;;  %s249_s28 = scalar_lea.vmem %s684_s2, %s523_s25 }
  0x11   : > { %v577_v1 = vld [vmem:[%s242_s22] sm:$0xff]   ;;  %v578_v2 = vld [vmem:[%s242_s22 + $0x8] sm:$0xff]   ;;  %v579_v3 = vld [vmem:[%s242_s22 + $0x10] sm:$0xff]   ;;  %s524_s29 = sshll.u32 %s692_s15, 3 }
  0x12   : > { %540 = vmatpush3.bf16.msra.mxu0 %v577_v1  ;;  %v580_v4 = vld [vmem:[%s242_s22 + $0x18] sm:$0xff]   ;;  %s256_s6 = scalar_lea.vmem %s685_s3, %s524_s29  ;;  %s263_s9 = scalar_lea.vmem %s686_s4, %s524_s29 }
  0x13   : > { %541 = vmatprep.subr.bf16.mxu0 %v605_v0 }
  0x16   : > { %542 = vmatpush3.bf16.msra.mxu0 %v578_v2 }
  0x17   : > { %543 = vmatprep.subr.bf16.mxu0 %v605_v0 }
  0x1a   : > { %544 = vmatpush3.bf16.msra.mxu0 %v579_v3 }
  0x1b   : > { %545 = vmatprep.subr.bf16.mxu0 %v605_v0 }
  0x1e   : > { %546 = vmatpush3.bf16.msra.mxu0 %v580_v4 }
  0x21   : > { %548 = vmatmul.mubr.msk.bf16.vlgmr.msra.gmra.mrb[0].mxu0 %vm298_vm1, %v265_v5 }
  0xf4   : > { %v336_v6 = vpop.f32.mrb[0].mxu0 }
  0xf5   : > { %v342_v7 = vmul.f32 0.2, %v336_v6  ;;  %v549_v8 = vpop.f32.mrb[1].mxu0 }
  0xf6   : > { %v339_v9 = vpop.f32.mrb[2].mxu0 }
  0xf7   : > { %v343_v10 = vmax.f32 %v336_v6, %v342_v7  ;;  %v550_v11 = vpop.f32.mrb[3].mxu0 }
  0xf9   : > { %v344_v12 = vpack.c.bf16 %v343_v10, %v343_v10  ;;  %v347_v13 = vsel %vm298_vm1, %v343_v10, 0.0  ;;  %v352_v14 = vmul.f32 %v343_v10, %v343_v10 }
  0xfa   : > { %348 = vadd.xlane.f32.xlu0 %v347_v13 }
  0xfb   : > { %346 = vst.msk [vmem:[%s249_s28] sm:$0xf] %vm345_vm2, %v344_v12  ;;  %v353_v15 = vsel %vm298_vm1, %v352_v14, 0.0 }
  0xfe   : > { %354 = vadd.xlane.f32.xlu0 %v353_v15 }
 0x187   : > { %v349_v16 = vpop.xlane.xlu0 %348 }
 0x188   : > { %351 = vst.msk [vmem:[%s256_s6] sm:$0xff] %vm350_vm3, %v349_v16 }
 0x18b   : > { %v355_v17 = vpop.xlane.xlu0 %354 }
 0x18c   : > { %356 = vst.msk [vmem:[%s263_s9] sm:$0xff] %vm350_vm3, %v355_v17 }
 0x18d PF: > { %s15_s17 = sadd.s32 1, %s603_s17   ;;  %s687_s15 = smov %s599_s16 }
 0x18e   : > { %p12_p5 = scmp.ge.s32.totalorder %s15_s17, 4   ;;  %s688_s16 = smov %s690_s18 }
 0x190   :  { %14 = sbr.rel (!%p12_p5) target bundleno = 2 (0x2), region = 82 }

</bundles_post_ra>
